<compile_context>
chip_gen: v7x
topology: tpu7x:2x2x1
jax: 0.10.0
libtpu: 0.0.40
codegen_flags: <defaults>
</compile_context>

<pallas_src>
import functools

import jax
import jax.numpy as jnp
from jax.experimental import pallas as pl
from jax.experimental.pallas import tpu as pltpu


# ----------------------------------------------------------------------------
# Host-side helpers.
# ----------------------------------------------------------------------------
def bilinear_matrix(in_size: int, out_size: int) -> jnp.ndarray:
    """Bilinear (align_corners=True) interpolation matrix, shape (out, in)."""
    if out_size == 1:
        src = jnp.zeros((1,), jnp.float32)
    else:
        src = jnp.arange(out_size, dtype=jnp.float32) * (in_size - 1) / (out_size - 1)
    i0 = jnp.clip(jnp.floor(src).astype(jnp.int32), 0, in_size - 1)
    i1 = jnp.minimum(i0 + 1, in_size - 1)
    frac = src - i0.astype(jnp.float32)
    rows = jnp.arange(out_size)
    mat = jnp.zeros((out_size, in_size), jnp.float32)
    mat = mat.at[rows, i0].add(1.0 - frac)
    mat = mat.at[rows, i1].add(frac)
    return mat


_TARGET_BLOCK_BYTES = 4 * 1024 * 1024   # ~4 MiB streamed input per grid step
_MIN_BLOCK_BYTES = 1 * 1024 * 1024      # don't shrink blocks below ~1 MiB for depth


def _bytes_per_batch_elem(H, W, n, Hh, Wh) -> int:
    return 4 * (H * W + n * Hh * Wh)


def _choose_blocking(B, H, W, n, Hh, Wh):
    """Pick (block_batch, padded_batch, grid_steps) for kernel 1.

    Small (~4 MiB) blocks keep the pipeline deep and VMEM pressure low
    (the kernel is HBM-bandwidth bound); an even grid balances v7x's two TCs.
    """
    bpe = _bytes_per_batch_elem(H, W, n, Hh, Wh)
    bt = max(1, _TARGET_BLOCK_BYTES // bpe)
    bt = min(bt, B)
    # Prefer >= 8 grid steps (pipeline ramp / megacore balance) as long as each
    # block still streams at least ~1 MiB.
    if B // bt < 8:
        bt_deep = max(1, B // 8)
        if bt_deep * bpe >= _MIN_BLOCK_BYTES:
            bt = bt_deep
    grid = -(-B // bt)
    if grid > 1 and grid % 2:
        grid += 1            # even number of "parallel" steps for v7x's two TCs
    return bt, grid * bt, grid


def _vmem_capacity_bytes() -> int:
    try:
        return int(pltpu.get_tpu_info().vmem_capacity_bytes)
    except Exception:
        return 64 * 1024 * 1024     # v7x per-TC capacity (smallest generation)


def _vmem_limit_bytes(bt, H, W, n, Hh, Wh) -> int:
    """Explicit accounting: double-buffered blocks + in-kernel temporaries + headroom."""
    f32 = 4
    block_in = f32 * bt * (H * W + n * Hh * Wh)        # mask + proj block
    interp = f32 * (Hh * H + W * Wh)                   # wh / ww_t
    block_out = f32 * bt * n
    temps = f32 * bt * (H * Wh + Hh * H + Hh * Wh)     # m2, broadcast wh, small
    temps += 2 * f32 * bt * n * Hh * Wh                # diff / sq temporaries
    need = 2 * (block_in + interp + block_out) + temps
    cap = _vmem_capacity_bytes()
    return int(min(cap * 7 // 8, max(32 << 20, need + (8 << 20))))


# ----------------------------------------------------------------------------
# Kernel 1: downsample masks + per-candidate squared-error spatial reduction.
# ----------------------------------------------------------------------------
def sse_kernel(wh_ref, ww_t_ref, mask_ref, proj_ref, loss_ref):
    bt, H, W = mask_ref.shape
    _, n, Hh, Wh = proj_ref.shape

    # Column interpolation: one (bt*H, W) @ (W, Wh) MXU matmul for the whole block.
    m2 = jnp.dot(mask_ref[...].reshape(bt * H, W), ww_t_ref[...],
                 preferred_element_type=jnp.float32)               # (bt*H, Wh)

    # Row interpolation: one batched (bt, Hh, H) @ (bt, H, Wh) matmul.
    wh_b = jnp.broadcast_to(wh_ref[...], (bt, Hh, H))
    small = jnp.einsum("bij,bjk->bik", wh_b, m2.reshape(bt, H, Wh),
                       preferred_element_type=jnp.float32)          # (bt, Hh, Wh)

    # Per-candidate SSE, batched over the whole block (no Python unroll).
    diff = proj_ref[...] - small[:, None, :, :]                     # (bt, n, Hh, Wh)
    sq = diff * diff
    per = jnp.sum(jnp.sum(sq, axis=3), axis=2)                      # (bt, n)

    loss_ref[0] = per                                               # one lane-dense store / step


def per_candidate_sse(wh, ww_t, masks, proj4):
    """masks: (B,H,W); proj4: (B,n,Hh,Wh) -> (B,n) per-candidate SSE."""
    B, H, W = masks.shape
    _, n, Hh, Wh = proj4.shape
    bt, B_pad, grid = _choose_blocking(B, H, W, n, Hh, Wh)
    if B_pad != B:   # ragged batch: zero-pad (padded rows give SSE 0, sliced away)
        masks = jnp.pad(masks, ((0, B_pad - B), (0, 0), (0, 0)))
        proj4 = jnp.pad(proj4, ((0, B_pad - B), (0, 0), (0, 0), (0, 0)))

    out = pl.pallas_call(
        sse_kernel,
        out_shape=jax.ShapeDtypeStruct((grid, bt, n), jnp.float32),
        grid_spec=pltpu.PrefetchScalarGridSpec(
            num_scalar_prefetch=0,
            grid=(grid,),
            in_specs=[
                pl.BlockSpec((Hh, H), lambda i: (0, 0)),
                pl.BlockSpec((W, Wh), lambda i: (0, 0)),
                pl.BlockSpec((bt, H, W), lambda i: (i, 0, 0)),
                pl.BlockSpec((bt, n, Hh, Wh), lambda i: (i, 0, 0, 0)),
            ],
            out_specs=pl.BlockSpec((1, bt, n), lambda i: (i, 0, 0)),
        ),
        compiler_params=pltpu.CompilerParams(
            dimension_semantics=("parallel",),
            vmem_limit_bytes=_vmem_limit_bytes(bt, H, W, n, Hh, Wh)),
    )(wh, ww_t, masks, proj4)
    return out.reshape(B_pad, n)[:B]


# ----------------------------------------------------------------------------
# Kernel 2: argmin, pose gather, quaternion math, final loss scalars.
# ----------------------------------------------------------------------------
def pose_kernel(loss_ref, ens_ref, stud_ref,
                ploss_ref, sloss_ref, tloss_ref, idx_ref, *, student_weight):
    loss = loss_ref[...]                               # (B, n)  f32
    B, n = loss.shape
    min_keep = jnp.min(loss, axis=-1, keepdims=True)   # (B, 1)
    iota_n = jax.lax.broadcasted_iota(jnp.int32, (B, n), 1)
    # first index achieving the minimum (torch argmin tie-break); compare stays f32
    idx = jnp.min(jnp.where(loss == min_keep, iota_n, n), axis=-1, keepdims=True)  # (B,1)
    onehot = (iota_n == idx).astype(jnp.float32)       # (B, n)

    ens = ens_ref[...]                                 # (B, n, 4)
    stud = stud_ref[...]                               # (B, 4)

    def select(c):
        return jnp.sum(ens[:, :, c] * onehot, axis=1, keepdims=True)  # (B, 1)

    a1, b1, c1, d1 = select(0), select(1), select(2), select(3)
    a2 = stud[:, 0:1]
    b2 = -stud[:, 1:2]
    c2 = -stud[:, 2:3]
    d2 = -stud[:, 3:4]

    # Hamilton product: best * conj(student)
    w = a1 * a2 - b1 * b2 - c1 * c2 - d1 * d2
    x = a1 * b2 + b1 * a2 + c1 * d2 - d1 * c2
    y = a1 * c2 - b1 * d2 + c1 * a2 + d1 * b2
    z = a1 * d2 + b1 * c2 - c1 * b2 + d1 * a2

    # Only the w component is used downstream; rsqrt uses the EUP slot (no divide chain).
    inv_norm = jax.lax.rsqrt(jnp.maximum(w * w + x * x + y * y + z * z, 1e-24))
    wn = w * inv_norm                                  # (B, 1)

    proj_loss = jnp.sum(min_keep, keepdims=True) / B            # (1, 1)
    student_loss = jnp.sum(1.0 - wn * wn, keepdims=True) / B    # (1, 1)

    ploss_ref[...] = proj_loss
    sloss_ref[...] = student_loss
    tloss_ref[...] = proj_loss + student_weight * student_loss
    idx_ref[...] = idx.astype(jnp.int32)


def pose_losses(cand_loss, ens, stud, student_weight):
    """cand_loss: (B,n); ens: (B,n,4); stud: (B,4)."""
    B, n = cand_loss.shape
    kernel = functools.partial(pose_kernel, student_weight=float(student_weight))
    return pl.pallas_call(
        kernel,
        out_shape=(
            jax.ShapeDtypeStruct((1, 1), jnp.float32),
            jax.ShapeDtypeStruct((1, 1), jnp.float32),
            jax.ShapeDtypeStruct((1, 1), jnp.float32),
            jax.ShapeDtypeStruct((B, 1), jnp.int32),
        ),
        grid_spec=pltpu.PrefetchScalarGridSpec(
            num_scalar_prefetch=0,
            grid=(1,),
            in_specs=[
                pl.BlockSpec((B, n), lambda i: (0, 0)),
                pl.BlockSpec((B, n, 4), lambda i: (0, 0, 0)),
                pl.BlockSpec((B, 4), lambda i: (0, 0)),
            ],
            out_specs=[
                pl.BlockSpec((1, 1), lambda i: (0, 0)),
                pl.BlockSpec((1, 1), lambda i: (0, 0)),
                pl.BlockSpec((1, 1), lambda i: (0, 0)),
                pl.BlockSpec((B, 1), lambda i: (0, 0)),
            ],
        ),
        compiler_params=pltpu.CompilerParams(dimension_semantics=("arbitrary",)),
    )(cand_loss, ens, stud)


# ----------------------------------------------------------------------------
# Wrapper mirroring UnsupervisedLoss.forward.
# ----------------------------------------------------------------------------
def unsupervised_loss(predictions, masks, training,
                      number_of_pose_predictor_candidates=4, student_weight=20.0):
    projection = predictions[0]
    B, H, W = masks.shape
    Hh, Wh = H // 2, W // 2
    wh = bilinear_matrix(H, Hh)          # (Hh, H)
    ww_t = bilinear_matrix(W, Wh).T      # (W, Wh)  pre-transposed on host (no in-kernel .T)

    if not training:
        proj4 = projection.reshape(B, 1, Hh, Wh)
        per = per_candidate_sse(wh, ww_t, masks, proj4)            # (B, 1)
        return dict(projection_loss=jnp.sum(per) / projection.shape[0])

    n = number_of_pose_predictor_candidates
    ensemble_poses, student_poses = predictions[1], predictions[2]
    proj4 = projection.reshape(B, n, Hh, Wh)                       # repeat_interleave grouping
    cand_loss = per_candidate_sse(wh, ww_t, masks, proj4)          # (B, n)
    ens = ensemble_poses.reshape(B, n, 4)
    p_loss, s_loss, t_loss, idx = pose_losses(cand_loss, ens, student_poses, student_weight)
    return dict(projection_loss=p_loss[0, 0],
                student_loss=s_loss[0, 0],
                total_loss=t_loss[0, 0],
                minimum_indexes=idx[:, 0])


# ----------------------------------------------------------------------------
# Pure-JAX reference (for a correctness check).
# ----------------------------------------------------------------------------
def reference(projection, ens, stud, masks, n, student_weight):
    B, H, W = masks.shape
    Hh, Wh = H // 2, W // 2
    wh = bilinear_matrix(H, Hh)
    ww = bilinear_matrix(W, Wh)
    small = jnp.einsum("oh,bhw,pw->bop", wh, masks, ww)          # (B,Hh,Wh)
    m_rep = jnp.repeat(small, n, axis=0)                          # (B*n,Hh,Wh)
    per = jnp.sum((projection - m_rep) ** 2, axis=(1, 2)).reshape(B, n)
    idx = jnp.argmin(per, axis=-1)
    min_loss = jnp.sum(per[jnp.arange(B), idx]) / B
    best = ens.reshape(B, n, 4)[jnp.arange(B), idx]
    q2 = stud * jnp.array([1.0, -1.0, -1.0, -1.0], jnp.float32)
    a1, b1, c1, d1 = best[:, 0], best[:, 1], best[:, 2], best[:, 3]
    a2, b2, c2, d2 = q2[:, 0], q2[:, 1], q2[:, 2], q2[:, 3]
    w = a1 * a2 - b1 * b2 - c1 * c2 - d1 * d2
    x = a1 * b2 + b1 * a2 + c1 * d2 - d1 * c2
    y = a1 * c2 - b1 * d2 + c1 * a2 + d1 * b2
    z = a1 * d2 + b1 * c2 - c1 * b2 + d1 * a2
    norm = jnp.maximum(jnp.sqrt(w * w + x * x + y * y + z * z), 1e-12)
    wn = w / norm
    s_loss = jnp.sum(1.0 - wn ** 2) / B
    return min_loss, s_loss, min_loss + student_weight * s_loss, idx


if __name__ == "__main__":
    B, n = 4, 4
    H = W = 16
    Hh, Wh = H // 2, W // 2
    student_weight = 20.0

    key = jax.random.PRNGKey(0)
    k1, k2, k3, k4, k5 = jax.random.split(key, 5)
    masks = jax.random.uniform(k1, (B, H, W), jnp.float32)
    projection = jax.random.uniform(k2, (B * n, Hh, Wh), jnp.float32)
    ensemble_poses = jax.random.normal(k3, (B * n, 4), jnp.float32)
    student_poses = jax.random.normal(k4, (B, 4), jnp.float32)
    projection_eval = jax.random.uniform(k5, (B, Hh, Wh), jnp.float32)

    # training path
    out = unsupervised_loss((projection, ensemble_poses, student_poses),
                            masks, training=True,
                            number_of_pose_predictor_candidates=n,
                            student_weight=student_weight)
    jax.block_until_ready(out)

    # eval path
    out_eval = unsupervised_loss((projection_eval,), masks, training=False)
    jax.block_until_ready(out_eval)

    # correctness check against the pure-JAX reference (training path)
    rp, rs, rt, ridx = reference(projection, ensemble_poses, student_poses,
                                 masks, n, student_weight)
    assert jnp.allclose(out["projection_loss"], rp, rtol=1e-5, atol=1e-5)
    assert jnp.allclose(out["student_loss"], rs, rtol=1e-5, atol=1e-5)
    assert jnp.allclose(out["total_loss"], rt, rtol=1e-5, atol=1e-5)
    assert jnp.array_equal(out["minimum_indexes"], ridx.astype(jnp.int32))

    # correctness check for the eval path
    wh_r = bilinear_matrix(H, Hh)
    ww_r = bilinear_matrix(W, Wh)
    small_r = jnp.einsum("oh,bhw,pw->bop", wh_r, masks, ww_r)
    ref_eval = jnp.sum((projection_eval - small_r) ** 2) / B
    assert jnp.allclose(out_eval["projection_loss"], ref_eval, rtol=1e-5, atol=1e-5)

    print("KERNEL_OK")
</pallas_src>

<mosaic_0001>
module attributes {stable_mosaic.version = 11 : i64} {
  func.func @sse_kernel(%arg0: i32, %arg1: memref<8x16xf32, #tpu.memory_space<vmem>>, %arg2: memref<16x8xf32, #tpu.memory_space<vmem>>, %arg3: memref<4x16x16xf32, #tpu.memory_space<vmem>>, %arg4: memref<4x4x8x8xf32, #tpu.memory_space<vmem>>, %arg5: memref<1x4x4xf32, #tpu.memory_space<vmem>>) attributes {dimension_semantics = [#tpu.dimension_semantics<parallel>], iteration_bounds = array<i64: 1>, scalar_prefetch = 0 : i64, scratch_operands = 0 : i64, tpu.core_type = #tpu.core_type<tc>, window_params = [{pipeline_mode = #tpu.pipeline_mode<synchronous>, transform_indices = @transform_0, window_bounds = array<i64: 8, 16>}, {pipeline_mode = #tpu.pipeline_mode<synchronous>, transform_indices = @transform_1, window_bounds = array<i64: 16, 8>}, {transform_indices = @transform_2, window_bounds = array<i64: 4, 16, 16>}, {transform_indices = @transform_3, window_bounds = array<i64: 4, 4, 8, 8>}, {transform_indices = @transform_4, window_bounds = array<i64: 1, 4, 4>}]} {
    %c0 = arith.constant 0 : index
    %c0_0 = arith.constant 0 : index
    %c0_1 = arith.constant 0 : index
    %0 = vector.load %arg3[%c0, %c0_0, %c0_1] : memref<4x16x16xf32, #tpu.memory_space<vmem>>, vector<4x16x16xf32>
    %1 = vector.shape_cast %0 : vector<4x16x16xf32> to vector<64x16xf32>
    %c0_2 = arith.constant 0 : index
    %c0_3 = arith.constant 0 : index
    %2 = vector.load %arg2[%c0_2, %c0_3] : memref<16x8xf32, #tpu.memory_space<vmem>>, vector<16x8xf32>
    %cst = arith.constant dense<0.000000e+00> : vector<64x8xf32>
    %3 = tpu.matmul %1, %2, %cst {dimension_numbers = #tpu.dot_dimension_numbers<[1], [0], [0], [1], [0, 0, 1, 1], [], []>} : vector<64x16xf32>, vector<16x8xf32>, vector<64x8xf32> -> vector<64x8xf32>
    %c0_4 = arith.constant 0 : index
    %c0_5 = arith.constant 0 : index
    %4 = vector.load %arg1[%c0_4, %c0_5] : memref<8x16xf32, #tpu.memory_space<vmem>>, vector<8x16xf32>
    %5 = vector.shape_cast %4 : vector<8x16xf32> to vector<1x8x16xf32>
    %6 = vector.broadcast %5 : vector<1x8x16xf32> to vector<4x8x16xf32>
    %7 = vector.shape_cast %3 : vector<64x8xf32> to vector<4x16x8xf32>
    "tpu.trace_start"() <{level = 10 : i32, message = "bij,bjk->bik"}> : () -> ()
    %cst_6 = arith.constant dense<0.000000e+00> : vector<4x8x8xf32>
    %8 = tpu.matmul %6, %7, %cst_6 {dimension_numbers = #tpu.dot_dimension_numbers<[2], [1], [1], [2], [0, 0, 0, 1, 1, 2], [0], [0]>} : vector<4x8x16xf32>, vector<4x16x8xf32>, vector<4x8x8xf32> -> vector<4x8x8xf32>
    "tpu.trace_stop"() : () -> ()
    %c0_7 = arith.constant 0 : index
    %c0_8 = arith.constant 0 : index
    %c0_9 = arith.constant 0 : index
    %c0_10 = arith.constant 0 : index
    %9 = vector.load %arg4[%c0_7, %c0_8, %c0_9, %c0_10] : memref<4x4x8x8xf32, #tpu.memory_space<vmem>>, vector<4x4x8x8xf32>
    %10 = vector.shape_cast %8 : vector<4x8x8xf32> to vector<4x1x8x8xf32>
    %11 = vector.broadcast %10 : vector<4x1x8x8xf32> to vector<4x4x8x8xf32>
    %12 = arith.subf %9, %11 : vector<4x4x8x8xf32>
    %13 = arith.mulf %12, %12 : vector<4x4x8x8xf32>
    %cst_11 = arith.constant dense<0.000000e+00> : vector<4x4x8xf32>
    %14 = vector.multi_reduction <add>, %13, %cst_11 [3] : vector<4x4x8x8xf32> to vector<4x4x8xf32>
    %cst_12 = arith.constant dense<0.000000e+00> : vector<4x4xf32>
    %15 = vector.multi_reduction <add>, %14, %cst_12 [2] : vector<4x4x8xf32> to vector<4x4xf32>
    %c0_13 = arith.constant 0 : index
    %c0_14 = arith.constant 0 : index
    %c0_15 = arith.constant 0 : index
    %16 = vector.load %arg5[%c0_13, %c0_14, %c0_15] : memref<1x4x4xf32, #tpu.memory_space<vmem>>, vector<1x4x4xf32>
    %17 = vector.shape_cast %16 : vector<1x4x4xf32> to vector<4x4xf32>
    %18 = vector.shape_cast %15 : vector<4x4xf32> to vector<1x4x4xf32>
    tpu.vector_store %arg5[%c0_13, %c0_14, %c0_15], %18 {strides = array<i32>} : memref<1x4x4xf32, #tpu.memory_space<vmem>>, vector<1x4x4xf32>,
    return
  }
  func.func @transform_0(%arg0: i32) -> (i32, i32) {
    %c0_i32 = arith.constant 0 : i32
    %c0_i32_0 = arith.constant 0 : i32
    %c0_i32_1 = arith.constant 0 : i32
    return %c0_i32, %c0_i32_0 : i32, i32
  }
  func.func @transform_1(%arg0: i32) -> (i32, i32) {
    %c0_i32 = arith.constant 0 : i32
    %c0_i32_0 = arith.constant 0 : i32
    %c0_i32_1 = arith.constant 0 : i32
    return %c0_i32, %c0_i32_0 : i32, i32
  }
  func.func @transform_2(%arg0: i32) -> (i32, i32, i32) {
    %c0_i32 = arith.constant 0 : i32
    %c0_i32_0 = arith.constant 0 : i32
    %c0_i32_1 = arith.constant 0 : i32
    return %arg0, %c0_i32, %c0_i32_0 : i32, i32, i32
  }
  func.func @transform_3(%arg0: i32) -> (i32, i32, i32, i32) {
    %c0_i32 = arith.constant 0 : i32
    %c0_i32_0 = arith.constant 0 : i32
    %c0_i32_1 = arith.constant 0 : i32
    %c0_i32_2 = arith.constant 0 : i32
    return %arg0, %c0_i32, %c0_i32_0, %c0_i32_1 : i32, i32, i32, i32
  }
  func.func @transform_4(%arg0: i32) -> (i32, i32, i32) {
    %c0_i32 = arith.constant 0 : i32
    %c0_i32_0 = arith.constant 0 : i32
    %c0_i32_1 = arith.constant 0 : i32
    return %arg0, %c0_i32, %c0_i32_0 : i32, i32, i32
  }
}

</mosaic_0001>

<bundles_post_ra>
// kernel: tpu_custom_call.1
= control target key start
LH: loop header
LB: loop body
LE: loop exit
PB: predicated region body
PF: predicated region fallthrough
CT: control target
= control target key end

     0   :  { %9 = vsyncpa [#allocation3], 0  ;;  %s1048_s0 = inlined_call_operand.vmem [shape: f32[8,16], index: 0, kind: input, shape index: {}]   ;;  %s1049_s1 = inlined_call_operand.vmem [shape: f32[16,8], index: 1, kind: input, shape index: {}]   ;;  %s1050_s2 = inlined_call_operand.hbm [shape: f32[4,16,16], index: 2, kind: input, shape index: {}]   ;;  %s1051_s3 = inlined_call_operand.hbm [shape: f32[4,4,8,8], index: 3, kind: input, shape index: {}]   ;;  %s1052_s4 = inlined_call_operand.hbm [shape: f32[1,4,4], index: 4, kind: output, shape index: {}]  }
   0x1   :  { %10 = vsyncpa [#allocation6], 0 }
   0x2   :  { %11 = vsyncpa [#allocation4], 0  ;;  %s897_s15 = smov [#allocation2]   ;;  %s825_s19 = scalar_lea.hbm %s1050_s2, 1024 }
   0x3   :  { %s21_s16 = sshll.u32 %s897_s15, 4  ;;  %p826_p0 = scmp.ne.s32.totalorder %s1050_s2, %s825_s19  ;;  %s22_s16 = int_to_ptr.vmem [resolvable:$true] %s21_s16 }
   0x4   :  { %p829_p1 = scmp.lt.u32.totalorder %s825_s19, %s1050_s2 }
   0x6   :  { %p831_p2 = pnand %p829_p1, %p826_p0 }
   0x8   :  { %834 = shalt.err (!%p831_p2)
}
   0x9   :  { %s835_s24 = scalar_lea.vmem %s22_s16, 1024  ;;  %p840_p4 = scmp.lt.s32.totalorder %s22_s16, %s22_s16 }
   0xa   :  { %p836_p3 = scmp.ne.s32.totalorder %s22_s16, %s835_s24  ;;  %p841_p5 = scmp.lt.s32.totalorder %s835_s24, %s835_s24 }
   0xc   :  { %p842_p6 = por %p841_p5, %p840_p4 }
   0xe   :  { %p843_p7 = pnand %p842_p6, %p836_p3 }
  0x10   :  { %846 = shalt.err (!%p843_p7)
}
  0x11   :  { %s898_s25 = smov 128   ;;  %s899_s26 = smov 8  }
  0x12   :  { %27 = dma.hbm_to_vmem [thread:$0]  %s1050_s2, 1024, %s22_s16, [#allocation3], %s898_s25, %s898_s25, %s899_s26  }
  0x13   :  { %s900_s29 = smov [#allocation5]   ;;  %s847_s7 = scalar_lea.hbm %s1051_s3, 2048 }
  0x14   :  { %s33_s30 = sshll.u32 %s900_s29, 4  ;;  %p848_p8 = scmp.ne.s32.totalorder %s1051_s3, %s847_s7  ;;  %s34_s30 = int_to_ptr.vmem [resolvable:$true] %s33_s30 }
  0x15   :  { %p851_p9 = scmp.lt.u32.totalorder %s847_s7, %s1051_s3 }
  0x17   :  { %p853_p10 = pnand %p851_p9, %p848_p8 }
  0x19   :  { %856 = shalt.err (!%p853_p10)
}
  0x1a   :  { %s857_s12 = scalar_lea.vmem %s34_s30, 2048  ;;  %p862_p12 = scmp.lt.s32.totalorder %s34_s30, %s34_s30 }
  0x1b   :  { %p858_p11 = scmp.ne.s32.totalorder %s34_s30, %s857_s12  ;;  %p863_p13 = scmp.lt.s32.totalorder %s857_s12, %s857_s12 }
  0x1d   :  { %p864_p0 = por %p863_p13, %p862_p12 }
  0x1f   :  { %p865_p1 = pnand %p864_p0, %p858_p11 }
  0x21   :  { %868 = shalt.err (!%p865_p1)
}
  0x22   :  { %39 = dma.hbm_to_vmem [thread:$0]  %s1051_s3, 2048, %s34_s30, [#allocation6], %s898_s25, %s898_s25, %s899_s26  }
  0x23   :  { %891 = dma.done.wait [#allocation3], 1024  }
  0x24   :  { %892 = vsyncadd [#allocation3], 4294966272 }
  0x25   :  { %893 = dma.done.wait [#allocation6], 2048  }
  0x26   :  { %894 = vsyncadd [#allocation6], 4294965248  ;;  %vm56_vm0 = vcmask 130048   ;;  %v54_v0 = vld [vmem:[%s1049_s1] sm:$0xff]  ;;  %v55_v1 = vld [vmem:[%s1049_s1 + $0x8] sm:$0xff]  ;;  %v901_v11 = vmov 0.0|0.0  }
  0x27   :  { %v46_v2 = vld [vmem:[#allocation2] sm:$0xff]  ;;  %v801_v3 = vpack.c.bf16 %v55_v1, %v54_v0  ;;  %v47_v4 = vld [vmem:[#allocation2 + $0x8] sm:$0xff]  ;;  %v48_v5 = vld [vmem:[#allocation2 + $0x10] sm:$0xff]  ;;  %805 = vmatprep.subr.bf16.mxu1 %v901_v11  ;;  %vm902_vm1 = vmmov 0   ;;  %v903_v12 = vmov 0.0   ;;  %vm518_vm2 = vcmask 64512  }
  0x28   :  { %761 = vmatprep.mubr.msk.f32.mxu0 %vm56_vm0, %v46_v2  ;;  %v49_v6 = vld [vmem:[#allocation2 + $0x18] sm:$0xff]  ;;  %v50_v7 = vld [vmem:[#allocation2 + $0x20] sm:$0xff]  ;;  %v51_v8 = vld [vmem:[#allocation2 + $0x28] sm:$0xff]  ;;  %777 = vmatprep.mubr.msk.f32.mxu1 %vm902_vm1, %v903_v12  ;;  %vm649_vm3 = vcmask 1041409   ;;  %vm651_vm4 = vcmask 1042434   ;;  %vm653_vm5 = vcmask 1043459  }
  0x29   :  { %802 = vmatprep.subr.bf16.mxu0 %v801_v3  ;;  %v52_v9 = vld [vmem:[#allocation2 + $0x30] sm:$0xff]  ;;  %v53_v10 = vld [vmem:[#allocation2 + $0x38] sm:$0xff]  ;;  %v186_v17 = vld [vmem:[%s1048_s0] sm:$0xff]  ;;  %vm668_vm6 = vcmask 60416   ;;  %s904_s0 = smov [#allocation7]   ;;  %vm705_vm7 = vcmask 27648  }
  0x2a   :  { %804 = vmatpush3.bf16.msra.mxu0 %v801_v3  ;;  %v470_v26 = vld [vmem:[#allocation5] sm:$0xff]  ;;  %v471_v27 = vld [vmem:[#allocation5 + $0x8] sm:$0xff]  ;;  %v472_v32 = vld [vmem:[#allocation5 + $0x10] sm:$0xff]  ;;  %s713_s18 = sshll.u32 %s904_s0, 4  ;;  %s714_s18 = int_to_ptr.vmem [resolvable:$true] %s713_s18 }
  0x2b   :  { %v474_v33 = vld [vmem:[#allocation5 + $0x20] sm:$0xff]  ;;  %v475_v35 = vld [vmem:[#allocation5 + $0x28] sm:$0xff]  ;;  %v473_v42 = vld [vmem:[#allocation5 + $0x18] sm:$0xff]  ;;  %s869_s19 = scalar_lea.vmem %s714_s18, 64  ;;  %p874_p3 = scmp.lt.s32.totalorder %s714_s18, %s714_s18 }
  0x2c   :  { %v476_v44 = vld [vmem:[#allocation5 + $0x30] sm:$0xff]  ;;  %v478_v49 = vld [vmem:[#allocation5 + $0x40] sm:$0xff]  ;;  %v477_v55 = vld [vmem:[#allocation5 + $0x38] sm:$0xff]  ;;  %p870_p2 = scmp.ne.s32.totalorder %s714_s18, %s869_s19  ;;  %p875_p4 = scmp.lt.s32.totalorder %s869_s19, %s869_s19 }
  0x2d   :  { %762 = vmatmul.mubr.msk.f32.vlgmr.msra.gmra.mrb[0].mxu0 %vm56_vm0, %v47_v4  ;;  %v479_v57 = vld [vmem:[#allocation5 + $0x48] sm:$0xff]  ;;  %v480_v60 = vld [vmem:[#allocation5 + $0x50] sm:$0xff] }
  0x2e   :  { %764 = vmatprep.mubr.msk.f32.mxu0 %vm56_vm0, %v48_v5  ;;  %v483_v5 = vld [vmem:[#allocation5 + $0x68] sm:$0xff]  ;;  %p876_p5 = por %p875_p4, %p874_p3 }
  0x30   :  { %p877_p6 = pnand %p876_p5, %p870_p2 }
  0x31   :  { %765 = vmatmul.mubr.msk.f32.gmra.mrb[2].mxu0 %vm56_vm0, %v49_v6 }
  0x32   :  { %767 = vmatprep.mubr.msk.f32.mxu0 %vm56_vm0, %v50_v7 }
  0x35   :  { %768 = vmatmul.mubr.msk.f32.gmra.mrb[4].mxu0 %vm56_vm0, %v51_v8 }
  0x36   :  { %770 = vmatprep.mubr.msk.f32.mxu0 %vm56_vm0, %v52_v9 }
  0x39   :  { %771 = vmatmul.mubr.msk.f32.gmra.mrb[6].mxu0 %vm56_vm0, %v53_v10  ;;  %v481_v10 = vld [vmem:[#allocation5 + $0x58] sm:$0xff] }
 0x100   :  { %v763_v13 = vpop.f32.mrb[0].mxu0 }
 0x101   :  { %v147_v14 = vpop.f32.mrb[1].mxu0 }
 0x102   :  { %v806_v15 = vpack.c.bf16 %v763_v13, %v147_v14  ;;  %v484_v14 = vld [vmem:[#allocation5 + $0x70] sm:$0xff] }
 0x104   :  { %v766_v16 = vpop.f32.mrb[2].mxu0  ;;  %807 = vmatpush3.bf16.msra.mxu1 %v806_v15  ;;  %v482_v15 = vld [vmem:[#allocation5 + $0x60] sm:$0xff] }
 0x105   :  { %v157_v18 = vpop.f32.mrb[3].mxu0  ;;  %808 = vmatprep.subr.bf16.mxu1 %v901_v11 }
 0x106   :  { %v809_v19 = vpack.c.bf16 %v766_v16, %v157_v18 }
 0x107   :  { %778 = vmatmul.mubr.msk.f32.vlgmr.msra.gmra.mrb[0].mxu1 %vm56_vm0, %v186_v17 }
 0x108   :  { %810 = vmatpush3.bf16.msra.mxu1 %v809_v19  ;;  %784 = vmatprep.mubr.msk.f32.mxu1 %vm902_vm1, %v903_v12  ;;  %v769_v20 = vpop.f32.mrb[4].mxu0 }
 0x109   :  { %v167_v21 = vpop.f32.mrb[5].mxu0  ;;  %811 = vmatprep.subr.bf16.mxu1 %v901_v11 }
 0x10a   :  { %v812_v22 = vpack.c.bf16 %v769_v20, %v167_v21 }
 0x10b   :  { %785 = vmatmul.mubr.msk.f32.vlgmr.msra.gmra.mrb[2].mxu1 %vm56_vm0, %v186_v17 }
 0x10c   :  { %813 = vmatpush3.bf16.msra.mxu1 %v812_v22  ;;  %791 = vmatprep.mubr.msk.f32.mxu1 %vm902_vm1, %v903_v12  ;;  %v772_v23 = vpop.f32.mrb[6].mxu0 }
 0x10d   :  { %v177_v24 = vpop.f32.mrb[7].mxu0  ;;  %814 = vmatprep.subr.bf16.mxu1 %v901_v11 }
 0x10e   :  { %v815_v25 = vpack.c.bf16 %v772_v23, %v177_v24  ;;  %v485_v24 = vld [vmem:[#allocation5 + $0x78] sm:$0xff] }
 0x10f   :  { %792 = vmatmul.mubr.msk.f32.vlgmr.msra.gmra.mrb[4].mxu1 %vm56_vm0, %v186_v17 }
 0x110   :  { %816 = vmatpush3.bf16.msra.mxu1 %v815_v25  ;;  %798 = vmatprep.mubr.msk.f32.mxu1 %vm902_vm1, %v903_v12 }
 0x113   :  { %799 = vmatmul.mubr.msk.f32.vlgmr.msra.gmra.mrb[6].mxu1 %vm56_vm0, %v186_v17 }
 0x1da   :  { %v256_v28 = vpop.f32.mrb[0].mxu1 }
 0x1db   :  { %v779_v29 = vpop.f32.mrb[1].mxu1  ;;  %v486_v30 = vsub.f32 %v470_v26, %v256_v28  ;;  %v487_v31 = vsub.f32 %v471_v27, %v256_v28  ;;  %v488_v37 = vsub.f32 %v472_v32, %v256_v28  ;;  %v489_v48 = vsub.f32 %v473_v42, %v256_v28 }
 0x1dd   :  { %v502_v34 = vmul.f32 %v486_v30, %v486_v30  ;;  %v503_v40 = vmul.f32 %v487_v31, %v487_v31  ;;  %v504_v46 = vmul.f32 %v488_v37, %v488_v37  ;;  %v505_v58 = vmul.f32 %v489_v48, %v489_v48 }
 0x1de   :  { %v326_v36 = vpop.f32.mrb[2].mxu1 }
 0x1df   :  { %v786_v38 = vpop.f32.mrb[3].mxu1  ;;  %v519_v39 = vsel %vm518_vm2, %v502_v34, 0.0  ;;  %v490_v41 = vsub.f32 %v474_v33, %v326_v36  ;;  %v491_v43 = vsub.f32 %v475_v35, %v326_v36  ;;  %v522_v50 = vsel %vm518_vm2, %v503_v40, 0.0 }
 0x1e0   :  { %520 = vadd.xlane.f32.xlu0 %v519_v39  ;;  %v492_v53 = vsub.f32 %v476_v44, %v326_v36  ;;  %v525_v61 = vsel %vm518_vm2, %v504_v46, 0.0  ;;  %v493_v0 = vsub.f32 %v477_v55, %v326_v36  ;;  %v528_v6 = vsel %vm518_vm2, %v505_v58, 0.0 }
 0x1e1   :  { %v506_v45 = vmul.f32 %v490_v41, %v490_v41  ;;  %v507_v52 = vmul.f32 %v491_v43, %v491_v43  ;;  %v583_v34 = vlaneseq }
 0x1e2   :  { %v396_v47 = vpop.f32.mrb[4].mxu1  ;;  %v508_v63 = vmul.f32 %v492_v53, %v492_v53  ;;  %v509_v8 = vmul.f32 %v493_v0, %v493_v0 }
 0x1e3   :  { %v531_v51 = vsel %vm518_vm2, %v506_v45, 0.0  ;;  %v793_v54 = vpop.f32.mrb[5].mxu1  ;;  %v494_v56 = vsub.f32 %v478_v49, %v396_v47  ;;  %v534_v62 = vsel %vm518_vm2, %v507_v52, 0.0  ;;  %v495_v2 = vsub.f32 %v479_v57, %v396_v47 }
 0x1e4   :  { %523 = vadd.xlane.f32.xlu0 %v522_v50  ;;  %532 = vadd.xlane.f32.xlu1 %v531_v51  ;;  %v496_v4 = vsub.f32 %v480_v60, %v396_v47  ;;  %v537_v7 = vsel %vm518_vm2, %v508_v63, 0.0  ;;  %v540_v16 = vsel %vm518_vm2, %v509_v8, 0.0  ;;  %v497_v17 = vsub.f32 %v481_v10, %v396_v47 }
 0x1e5   :  { %v510_v3 = vmul.f32 %v494_v56, %v494_v56  ;;  %v511_v9 = vmul.f32 %v495_v2, %v495_v2  ;;  %v584_v36 = vand.u32 127, %v583_v34  ;;  %v586_v37 = vshrl.u32 %v583_v34, 7 }
 0x1e6   :  { %v466_v59 = vpop.f32.mrb[6].mxu1  ;;  %v512_v12 = vmul.f32 %v496_v4, %v496_v4  ;;  %v513_v23 = vmul.f32 %v497_v17, %v497_v17 }
 0x1e7   :  { %v800_v1 = vpop.f32.mrb[7].mxu1  ;;  %v543_v11 = vsel %vm518_vm2, %v510_v3, 0.0  ;;  %v499_v13 = vsub.f32 %v483_v5, %v466_v59  ;;  %v546_v18 = vsel %vm518_vm2, %v511_v9, 0.0  ;;  %v500_v21 = vsub.f32 %v484_v14, %v466_v59 }
 0x1e8   :  { %526 = vadd.xlane.f32.xlu0 %v525_v61  ;;  %535 = vadd.xlane.f32.xlu1 %v534_v62  ;;  %v549_v19 = vsel %vm518_vm2, %v512_v12, 0.0  ;;  %v498_v22 = vsub.f32 %v482_v15, %v466_v59  ;;  %v552_v28 = vsel %vm518_vm2, %v513_v23, 0.0  ;;  %v501_v29 = vsub.f32 %v485_v24, %v466_v59 }
 0x1e9   :  { %v515_v20 = vmul.f32 %v499_v13, %v499_v13  ;;  %v516_v26 = vmul.f32 %v500_v21, %v500_v21  ;;  %v995_v40 = vsub.s32 %v584_v36, %v586_v37 }
 0x1ea   :  { %v514_v27 = vmul.f32 %v498_v22, %v498_v22  ;;  %v517_v32 = vmul.f32 %v501_v29, %v501_v29 }
 0x1eb   :  { %v558_v25 = vsel %vm518_vm2, %v515_v20, 0.0  ;;  %v561_v30 = vsel %vm518_vm2, %v516_v26, 0.0 }
 0x1ec   :  { %529 = vadd.xlane.f32.xlu0 %v528_v6  ;;  %538 = vadd.xlane.f32.xlu1 %v537_v7  ;;  %v555_v31 = vsel %vm518_vm2, %v514_v27, 0.0  ;;  %v564_v33 = vsel %vm518_vm2, %v517_v32, 0.0 }
 0x1f0   :  { %541 = vadd.xlane.f32.xlu1 %v540_v16  ;;  %544 = vadd.xlane.f32.xlu0 %v543_v11 }
 0x1f4   :  { %547 = vadd.xlane.f32.xlu1 %v546_v18  ;;  %550 = vadd.xlane.f32.xlu0 %v549_v19 }
 0x1f8   :  { %553 = vadd.xlane.f32.xlu1 %v552_v28  ;;  %559 = vadd.xlane.f32.xlu0 %v558_v25 }
 0x1fc   :  { %562 = vadd.xlane.f32.xlu0 %v561_v30  ;;  %556 = vadd.xlane.f32.xlu1 %v555_v31 }
 0x200   :  { %565 = vadd.xlane.f32.xlu1 %v564_v33 }
 0x26d   :  { %v521_v35 = vpop.xlane.xlu0 %520 }
 0x26e   :  { %v588_v45 = vrot.slane %v521_v35, %v995_v40 }
 0x271   :  { %v524_v38 = vpop.xlane.xlu0 %523  ;;  %v533_v39 = vpop.xlane.xlu1 %532 }
 0x272   :  { %v592_v43 = vrot.slane %v524_v38, %v995_v40  ;;  %v604_v53 = vrot.slane %v533_v39, %v995_v40 }
 0x274   :  { %v650_v48 = vsel %vm649_vm3, %v592_v43, %v588_v45 }
 0x275   :  { %v527_v41 = vpop.xlane.xlu0 %526  ;;  %v536_v42 = vpop.xlane.xlu1 %535 }
 0x276   :  { %v596_v44 = vrot.slane %v527_v41, %v995_v40  ;;  %v608_v49 = vrot.slane %v536_v42, %v995_v40 }
 0x278   :  { %v652_v52 = vsel %vm651_vm4, %v596_v44, %v650_v48  ;;  %v655_v58 = vsel %vm649_vm3, %v608_v49, %v604_v53 }
 0x279   :  { %v530_v46 = vpop.xlane.xlu0 %529  ;;  %v539_v47 = vpop.xlane.xlu1 %538 }
 0x27a   :  { %v600_v50 = vrot.slane %v530_v46, %v995_v40  ;;  %v612_v51 = vrot.slane %v539_v47, %v995_v40 }
 0x27c   :  { %v654_v54 = vsel %vm653_vm5, %v600_v50, %v652_v52  ;;  %v656_v60 = vsel %vm651_vm4, %v612_v51, %v655_v58 }
 0x27d   :  { %v542_v55 = vpop.xlane.xlu1 %541  ;;  %v545_v56 = vpop.xlane.xlu0 %544  ;;  %v669_v57 = vsel %vm668_vm6, %v654_v54, 0.0 }
 0x27e   :  { %v616_v59 = vrot.slane %v542_v55, %v995_v40  ;;  %670 = vadd.xlane.f32.xlu0 %v669_v57  ;;  %v620_v61 = vrot.slane %v545_v56, %v995_v40 }
 0x280   :  { %v657_v62 = vsel %vm653_vm5, %v616_v59, %v656_v60 }
 0x281   :  { %v548_v63 = vpop.xlane.xlu1 %547  ;;  %v551_v0 = vpop.xlane.xlu0 %550  ;;  %v672_v1 = vsel %vm668_vm6, %v657_v62, 0.0 }
 0x282   :  { %v624_v2 = vrot.slane %v548_v63, %v995_v40  ;;  %673 = vadd.xlane.f32.xlu1 %v672_v1  ;;  %v628_v3 = vrot.slane %v551_v0, %v995_v40 }
 0x284   :  { %v658_v4 = vsel %vm649_vm3, %v624_v2, %v620_v61 }
 0x285   :  { %v554_v5 = vpop.xlane.xlu1 %553  ;;  %v560_v6 = vpop.xlane.xlu0 %559  ;;  %v659_v8 = vsel %vm651_vm4, %v628_v3, %v658_v4 }
 0x286   :  { %v632_v7 = vrot.slane %v554_v5, %v995_v40  ;;  %v640_v9 = vrot.slane %v560_v6, %v995_v40 }
 0x288   :  { %v660_v10 = vsel %vm653_vm5, %v632_v7, %v659_v8 }
 0x289   :  { %v563_v11 = vpop.xlane.xlu0 %562  ;;  %v557_v12 = vpop.xlane.xlu1 %556  ;;  %v675_v13 = vsel %vm668_vm6, %v660_v10, 0.0 }
 0x28a   :  { %v636_v14 = vrot.slane %v557_v12, %v995_v40  ;;  %676 = vadd.xlane.f32.xlu0 %v675_v13  ;;  %v644_v15 = vrot.slane %v563_v11, %v995_v40 }
 0x28c   :  { %v661_v16 = vsel %vm649_vm3, %v640_v9, %v636_v14 }
 0x28d   :  { %v566_v17 = vpop.xlane.xlu1 %565  ;;  %v662_v19 = vsel %vm651_vm4, %v644_v15, %v661_v16 }
 0x28e   :  { %v648_v18 = vrot.slane %v566_v17, %v995_v40 }
 0x290   :  { %v663_v20 = vsel %vm653_vm5, %v648_v18, %v662_v19 }
 0x291   :  { %v678_v21 = vsel %vm668_vm6, %v663_v20, 0.0 }
 0x292   :  { %679 = vadd.xlane.f32.xlu1 %v678_v21 }
 0x30b   :  { %v671_v22 = vpop.xlane.xlu0 %670 }
 0x30c   :  { %v688_v27 = vrot.slane %v671_v22, %v995_v40 }
 0x30f   :  { %v674_v23 = vpop.xlane.xlu1 %673 }
 0x310   :  { %v692_v25 = vrot.slane %v674_v23, %v995_v40 }
 0x312   :  { %v701_v29 = vsel %vm649_vm3, %v692_v25, %v688_v27 }
 0x317   :  { %v677_v24 = vpop.xlane.xlu0 %676 }
 0x318   :  { %v696_v26 = vrot.slane %v677_v24, %v995_v40 }
 0x31a   :  { %v702_v31 = vsel %vm651_vm4, %v696_v26, %v701_v29 }
 0x31f   :  { %v680_v28 = vpop.xlane.xlu1 %679 }
 0x320   :  { %v700_v30 = vrot.slane %v680_v28, %v995_v40 }
 0x322   :  { %v703_v32 = vsel %vm653_vm5, %v700_v30, %v702_v31 }
 0x323   :  { %706 = vst.msk [vmem:[#allocation7] sm:$0xf] %vm705_vm7, %v703_v32 }
 0x324   :  { %880 = shalt.err (!%p877_p6)
}
 0x325   :  { %s881_s22 = scalar_lea.hbm %s1052_s4, 64 }
 0x326   :  { %p882_p7 = scmp.ne.s32.totalorder %s1052_s4, %s881_s22  ;;  %p885_p8 = scmp.lt.u32.totalorder %s881_s22, %s1052_s4 }
 0x328   :  { %p887_p9 = pnand %p885_p8, %p882_p7 }
 0x32a   :  { %890 = shalt.err (!%p887_p9)
}
 0x32b   :  { %716 = dma.vmem_to_hbm [thread:$0]  %s714_s18, 64, %s1052_s4, [#allocation4]  }
 0x32c   :  { %895 = dma.done.wait [#allocation4], 64  }
 0x32d   :  { %896 = vsyncadd [#allocation4], 4294967232 }
 0x32e   :  { %720 = vsyncpa [#allocation3], 1 }
 0x32f   :  { %721 = vsyncpa [#allocation6], 1 }
 0x330   :  { %722 = vsyncpa [#allocation4], 1 }

</bundles_post_ra>
